<compile_context>
chip_gen: v7x
topology: tpu7x:2x2x1
jax: 0.10.0
libtpu: 0.0.40
codegen_flags: <defaults>
</compile_context>

<pallas_src>
import jax
import jax.numpy as jnp
from jax.experimental import pallas as pl
from jax.experimental.pallas import tpu as pltpu


def _round_up(x: int, m: int) -> int:
    return ((x + m - 1) // m) * m


def _vmem_capacity_bytes() -> int:
    """Physical VMEM capacity; conservative 64 MiB fallback if query fails."""
    try:
        info = pltpu.get_tpu_info()
        cap = getattr(info, "vmem_capacity_bytes", None)
        if cap:
            return int(cap)
    except Exception:
        pass
    return 64 * 1024 * 1024


def _pos_embed_bcast_kernel(wpos_ref, out_ref):
    # wpos_ref: (ts, td) tile of W_pos (rows at the seq-tile offset)
    # out_ref:  (tb, ts, td) output tile for tb batch rows
    out_ref[...] = jnp.broadcast_to(wpos_ref[...][None, :, :], out_ref.shape)


def _pos_embed_flat_kernel(wrow_ref, out_ref):
    # wrow_ref: (1, L) flattened W_pos[:seq]   (resident: single input DMA)
    # out_ref:  (tb, L) flattened output tile for tb batch rows
    out_ref[...] = jnp.broadcast_to(wrow_ref[...], out_ref.shape)


def pos_embed(tokens: jax.Array, w_pos: jax.Array) -> jax.Array:
    """Equivalent of PosEmbed.forward.

    tokens: int [batch, seq]   (values unused, only shape matters)
    w_pos:  float [n_ctx, d_model]
    returns [batch, seq, d_model] = broadcast of w_pos[:seq]
    """
    batch, seq = tokens.shape
    n_ctx, d_model = w_pos.shape
    assert seq <= n_ctx, "sequence length exceeds n_ctx"

    dtype = w_pos.dtype
    itemsize = jnp.dtype(dtype).itemsize
    sub = {4: 8, 2: 16, 1: 32}.get(itemsize, 8)  # sublane packing

    # Generation-aware budgets.
    vmem_cap = _vmem_capacity_bytes()
    small_vmem = vmem_cap <= 64 * 1024 * 1024  # v7x-class (2 TC, 64 MiB VMEM)
    if small_vmem:
        target_out = 14 << 20   # per-step output write-back target
        max_in_tile = 4 << 20   # per-step W_pos tile cap
    else:
        target_out = 24 << 20   # v5e / v6e: 128 MiB VMEM, grow the steps
        max_in_tile = 8 << 20

    out_bytes = batch * seq * d_model * itemsize
    in_bytes = seq * d_model * itemsize
    cost = pl.CostEstimate(flops=0, transcendentals=0,
                           bytes_accessed=out_bytes + in_bytes)

    # ---- Path A: lane-dense flattened broadcast (d_model not a 128 multiple)
    L = seq * d_model
    row_bytes = L * itemsize
    if (d_model % 128 != 0
            and row_bytes <= max_in_tile
            and row_bytes * sub <= target_out):
        tb_target = max(1, target_out // row_bytes)
        if tb_target >= batch:
            tb = batch
        else:
            tb = max(sub, (tb_target // sub) * sub)
        # Tiny wrapper-side copy (seq*d_model elems) -- negligible vs output.
        w_flat = w_pos[:seq].reshape(1, L)
        out_tile_bytes = tb * row_bytes
        vmem_limit = min(
            max(2 * (out_tile_bytes + row_bytes) + (4 << 20), 16 << 20),
            vmem_cap * 3 // 4)
        out_flat = pl.pallas_call(
            _pos_embed_flat_kernel,
            out_shape=jax.ShapeDtypeStruct((batch, L), dtype),
            grid_spec=pltpu.PrefetchScalarGridSpec(
                num_scalar_prefetch=0,
                grid=(pl.cdiv(batch, tb),),
                in_specs=[pl.BlockSpec((1, L), lambda b: (0, 0))],  # resident
                out_specs=pl.BlockSpec((tb, L), lambda b: (b, 0)),
            ),
            compiler_params=pltpu.CompilerParams(
                dimension_semantics=("parallel",),
                vmem_limit_bytes=int(vmem_limit),
            ),
            cost_estimate=cost,
        )(w_flat)
        return out_flat.reshape(batch, seq, d_model)

    # ---- Path B: general tiled broadcast, batch innermost -------------------
    if d_model % 128 == 0:
        max_td = max(128, ((max_in_tile // (sub * itemsize)) // 128) * 128)
        td = min(d_model, max_td)
    else:
        td = d_model  # rare fallback: full (non-128) lane dim, masked stores

    seq_pad = _round_up(seq, sub)
    ts_cap = max(sub, ((max_in_tile // (td * itemsize)) // sub) * sub)
    ts = min(seq_pad, ts_cap)

    tile_in_bytes = ts * td * itemsize
    tb = max(1, min(batch, target_out // tile_in_bytes))

    ns = pl.cdiv(seq, ts)
    nd = pl.cdiv(d_model, td)
    # On 2-TensorCore chips keep >= 2 grid steps along batch only when the
    # seq/d_model axes don't already provide core-splittable parallel work.
    if small_vmem and batch >= 2 and ns * nd < 2:
        tb = min(tb, max(1, batch // 2))
    nb = pl.cdiv(batch, tb)

    out_tile_bytes = tb * tile_in_bytes
    vmem_limit = min(
        max(2 * (out_tile_bytes + tile_in_bytes) + (4 << 20), 16 << 20),
        vmem_cap * 3 // 4)

    return pl.pallas_call(
        _pos_embed_bcast_kernel,
        out_shape=jax.ShapeDtypeStruct((batch, seq, d_model), dtype),
        grid_spec=pltpu.PrefetchScalarGridSpec(
            num_scalar_prefetch=0,
            # Batch innermost: W_pos block index (s, d) is constant between
            # consecutive steps, so the pipeline elides the input re-fetch.
            grid=(ns, nd, nb),
            in_specs=[pl.BlockSpec((ts, td), lambda s, d, b: (s, d))],
            out_specs=pl.BlockSpec((tb, ts, td), lambda s, d, b: (b, s, d)),
        ),
        compiler_params=pltpu.CompilerParams(
            dimension_semantics=("parallel", "parallel", "parallel"),
            vmem_limit_bytes=int(vmem_limit),
        ),
        cost_estimate=cost,
    )(w_pos)


if __name__ == "__main__":
    # Small, deterministic config consistent with the module's shapes.
    batch = 2
    seq = 8
    n_ctx = 16
    d_model = 128
    d_vocab = 64
    init_range = 0.02

    key = jax.random.PRNGKey(0)
    k_w, k_tok = jax.random.split(key)

    # Deterministic parameter init mirroring nn.init.normal_(std=init_range).
    w_pos = init_range * jax.random.normal(k_w, (n_ctx, d_model), dtype=jnp.float32)
    tokens = jax.random.randint(k_tok, (batch, seq), 0, d_vocab, dtype=jnp.int32)

    out = pos_embed(tokens, w_pos)
    out = jax.block_until_ready(out)

    # Reference check (plain JAX broadcast of W_pos[:seq]).
    ref = jnp.broadcast_to(w_pos[:seq][None, :, :], (batch, seq, d_model))
    assert out.shape == (batch, seq, d_model)
    assert out.dtype == jnp.float32
    assert bool(jnp.allclose(out, ref))

    print("KERNEL_OK")
</pallas_src>

<mosaic_0001>
module attributes {stable_mosaic.version = 11 : i64} {
  func.func @_pos_embed_bcast_kernel(%arg0: i32, %arg1: i32, %arg2: i32, %arg3: memref<8x128xf32, #tpu.memory_space<vmem>>, %arg4: memref<1x8x128xf32, #tpu.memory_space<vmem>>) attributes {dimension_semantics = [#tpu.dimension_semantics<parallel>, #tpu.dimension_semantics<parallel>, #tpu.dimension_semantics<parallel>], iteration_bounds = array<i64: 1, 1, 2>, scalar_prefetch = 0 : i64, scratch_operands = 0 : i64, tpu.core_type = #tpu.core_type<tc>, window_params = [{transform_indices = @transform_0, window_bounds = array<i64: 8, 128>}, {transform_indices = @transform_1, window_bounds = array<i64: 1, 8, 128>}]} {
    %c0 = arith.constant 0 : index
    %c0_0 = arith.constant 0 : index
    %0 = vector.load %arg3[%c0, %c0_0] : memref<8x128xf32, #tpu.memory_space<vmem>>, vector<8x128xf32>
    %1 = vector.shape_cast %0 : vector<8x128xf32> to vector<1x8x128xf32>
    %c0_1 = arith.constant 0 : index
    %c0_2 = arith.constant 0 : index
    %c0_3 = arith.constant 0 : index
    %2 = vector.load %arg4[%c0_1, %c0_2, %c0_3] : memref<1x8x128xf32, #tpu.memory_space<vmem>>, vector<1x8x128xf32>
    tpu.vector_store %arg4[%c0_1, %c0_2, %c0_3], %1 {strides = array<i32>} : memref<1x8x128xf32, #tpu.memory_space<vmem>>, vector<1x8x128xf32>,
    return
  }
  func.func @transform_0(%arg0: i32, %arg1: i32, %arg2: i32) -> (i32, i32) {
    %c0_i32 = arith.constant 0 : i32
    return %arg0, %arg1 : i32, i32
  }
  func.func @transform_1(%arg0: i32, %arg1: i32, %arg2: i32) -> (i32, i32, i32) {
    %c0_i32 = arith.constant 0 : i32
    return %arg2, %arg0, %arg1 : i32, i32, i32
  }
}

</mosaic_0001>

<bundles_post_ra>
// kernel: tpu_custom_call.1
= control target key start
LH: loop header
LB: loop body
LE: loop exit
PB: predicated region body
PF: predicated region fallthrough
CT: control target
= control target key end

     0   :  { %6 = vsyncpa [#allocation3], 0  ;;  %s583_s0 = inlined_call_operand.hbm [shape: f32[16,128], index: 0, kind: input, shape index: {}]   ;;  %s584_s1 = inlined_call_operand.hbm [shape: f32[2,8,128], index: 1, kind: output, shape index: {}]  }
   0x1   :  { %7 = vsyncpa [#allocation4], 0 }
   0x2   :  { %9 = vsyncpa [#allocation4 + $0x1], 0  ;;  %s435_s6 = smov 0   ;;  %s437_s7 = smov 0  }
   0x3   :  { %s439_s8 = smov 0   ;;  %s441_s9 = smov 0  }
   0x4   :  { %s443_s10 = smov 0   ;;  %s445_s11 = smov 0  }
   0x5 LB: > { %s234_s12 = sadd.s32 4294967295, %s421_s11   ;;  %s235_s13 = sadd.s32 4294967294, %s421_s11   ;;  %s421_s11 = sphi %s445_s11, %s15_s11   ;;  %s417_s10 = sphi %s443_s10, %s602_s10   ;;  %s413_s9 = sphi %s441_s9, %s601_s9   ;;  %s409_s8 = sphi %s439_s8, %s600_s8   ;;  %s405_s7 = sphi %s437_s7, %s599_s7   ;;  %s401_s6 = sphi %s435_s6, %s598_s6  }
   0x6   : > { %s27_s14 = sadd.s32 1, %s417_s10  ;;  %s73_s15 = sadd.s32 1, %s409_s8 }
   0x7   : > { %p28_p0 = scmp.ge.s32.totalorder %s27_s14, 2  ;;  %p83_p1 = scmp.ne.s32.totalorder %s409_s8, %s405_s7 }
   0x8   : > { %p84_p2 = scmp.eq.s32.totalorder %s234_s12, 1  ;;  %p89_p3 = scmp.ne.s32.totalorder %s405_s7, %s401_s6 }
   0x9   : > { %s604_s14 = smov (%p28_p0, %s27_s14), 0  ;;  %p90_p5 = scmp.eq.s32.totalorder %s235_s13, 1 }
   0xa   : > { %p475_p4 = por %p84_p2, %p83_p1  ;;  %s66_s17 = ssub.s32 %s417_s10, %s604_s14 }
   0xb   : > { %p236_p6 = scmp.ge.s32.totalorder %s421_s11, 1  ;;  %p71_p7 = scmp.eq.s32.totalorder %s66_s17, 0 }
   0xc   : > { %s589_s16 = scalar_select %p475_p4, 1, 0 }
   0xd   : > { %p482_p8 = por %p90_p5, %p89_p3  ;;  %p97_p9 = scmp.lt.s32.totalorder %s421_s11, 3 }
   0xe   : > { %s488_s19 = scalar_select %p71_p7, %s409_s8, %s73_s15  }
   0xf   : > { %s590_s18 = scalar_select %p482_p8, 1, 0 }
  0x10   : > { %p490_p10 = pnand %p236_p6, %p97_p9  ;;  %p494_p11 = scmp.eq.s32.totalorder %s234_s12, 0 }
  0x11   : > { %s423_s22 = smov [#allocation2]   ;;  %s311_s27 = scalar_lea.hbm %s583_s0, 128 }
  0x12   : > { %s591_s20 = scalar_select %p490_p10, 1, 0 }
  0x13   : > { %s592_s21 = scalar_select %p494_p11, 1, 0 }
  0x14   : > { %p251_p12 = pneg %p490_p10  ;;  %s113_s23 = sshll.u32 %s423_s22, 4  ;;  %s114_s23 = int_to_ptr.vmem [resolvable:$true] %s113_s23 }
  0x15   : > { %p312_p0 = scmp.ne.s32.totalorder %s583_s0, %s311_s27  ;;  %s316_s3 = scalar_lea.hbm %s583_s0, 256 }
  0x16   : > { %p502_p13 = pnand %p494_p11, %p251_p12  ;;  %p317_p5 = scmp.lt.u32.totalorder %s316_s3, %s311_s27 }
  0x17   : > { %p318_p6 = scmp.lt.u32.totalorder %s311_s27, %s583_s0 }
  0x18   : > { %p313_p1 = pneg %p502_p13 }
  0x19   : > { %p319_p7 = por %p318_p6, %p317_p5 }
  0x1a   : > { %p314_p2 = pnand %p313_p1, %p312_p0 }
  0x1c   : > { %p315_p3 = pneg %p314_p2 }
  0x1e   : > { %p320_p9 = pnand %p319_p7, %p315_p3 }
  0x20   : > { %323 = shalt.err (!%p320_p9)
}
  0x21   : > { %s324_s12 = scalar_lea.vmem %s114_s23, 128  ;;  %p332_p11 = scmp.lt.s32.totalorder %s114_s23, %s114_s23 }
  0x22   : > { %p325_p12 = scmp.ne.s32.totalorder %s114_s23, %s324_s12  ;;  %p333_p10 = scmp.lt.s32.totalorder %s324_s12, %s324_s12 }
  0x24   : > { %p327_p8 = pnand %p325_p12, %p313_p1  ;;  %p334_p0 = por %p333_p10, %p332_p11 }
  0x26   : > { %p328_p4 = pneg %p327_p8 }
  0x28   : > { %p335_p2 = pnand %p334_p0, %p328_p4 }
  0x2a   : > { %338 = shalt.err (!%p335_p2)
}
  0x2b   : > { %254 = dma.hbm_to_vmem [thread:$0]  (!%p502_p13), %s583_s0, 128, %s114_s23, [#allocation3]  }
  0x2c   : > { %p594_p5 = scmp.ne.s32.totalorder %s591_s20, 0 }
  0x2d   : > { %p595_p3 = scmp.ne.s32.totalorder (!%p594_p5), %s592_s21, 0 }
  0x2e   : > { %126 = sbr.rel (%p594_p5) target bundleno = 80 (0x50), region = 24 }
  0x35   : > { %392 = dma.done.wait (%p595_p3), [#allocation3], 128  }
  0x36   : > { %394 = vsyncadd (%p595_p3), [#allocation3], 4294967168  ;;  %s138_s17 = sand.u32 1, %s405_s7   ;;  %s242_s26 = sshll.u32 %s413_s9, 7  ;;  %v141_v0 = vld [vmem:[#allocation2] sm:$0xff] }
  0x37   : > { %s240_s22 = sshll.u32 %s138_s17, 3  ;;  %s538_s20 = scalar_lea.hbm %s584_s1, %s242_s26 }
  0x38   : > { %s140_s25 = scalar_lea.vmem [#allocation5], %s240_s22  ;;  %s144_s21 = scalar_lea.sflag [#allocation4], %s138_s17 }
  0x39   : > { %s159_s24 = sshll.u32 %s140_s25, 4  ;;  %142 = vst [vmem:[%s140_s25] sm:$0xff] %v141_v0  ;;  %p596_p8 = scmp.ne.s32.totalorder %s589_s16, 0  ;;  %s533_s24 = int_to_ptr.vmem [resolvable:$true] %s159_s24 }
  0x3a   : > { %s339_s28 = scalar_lea.vmem %s533_s24, 128  ;;  %s424_s29 = smov [#allocation5]  }
  0x3b   : > { %p340_p4 = scmp.ne.s32.totalorder %s533_s24, %s339_s28  ;;  %s343_s9 = sshll.u32 %s424_s29, 4  ;;  %s344_s9 = int_to_ptr.vmem [resolvable:$false] %s343_s9 }
  0x3c   : > { %s345_s30 = scalar_lea.vmem %s344_s9, 256  ;;  %p346_p13 = scmp.lt.s32.totalorder %s533_s24, %s344_s9 }
  0x3d   : > { %p341_p10 = pnand %p340_p4, %p596_p8  ;;  %p347_p1 = scmp.lt.s32.totalorder %s345_s30, %s339_s28 }
  0x3f   : > { %p342_p11 = pneg %p341_p10  ;;  %p348_p6 = por %p347_p1, %p346_p13 }
  0x41   : > { %p349_p7 = pnand %p348_p6, %p342_p11 }
  0x43   : > { %352 = shalt.err (!%p349_p7)
}
  0x44   : > { %s353_s2 = scalar_lea.hbm %s538_s20, 128  ;;  %s357_s5 = scalar_lea.hbm %s584_s1, 256 }
  0x45   : > { %p354_p9 = scmp.ne.s32.totalorder %s538_s20, %s353_s2  ;;  %p358_p2 = scmp.lt.u32.totalorder %s538_s20, %s584_s1 }
  0x46   : > { %p359_p5 = scmp.lt.u32.totalorder %s357_s5, %s353_s2  ;;  %p361_p4 = scmp.lt.u32.totalorder %s353_s2, %s538_s20 }
  0x47   : > { %p355_p12 = pnand %p354_p9, %p596_p8 }
  0x48   : > { %p360_p3 = por %p359_p5, %p358_p2 }
  0x49   : > { %p356_p0 = pneg %p355_p12 }
  0x4a   : > { %p362_p10 = por %p361_p4, %p360_p3 }
  0x4c   : > { %p363_p11 = pnand %p362_p10, %p356_p0 }
  0x4e   : > { %366 = shalt.err (!%p363_p11)
}
  0x4f   : > { %249 = dma.vmem_to_hbm [thread:$0]  (%p596_p8), %s533_s24, 128, %s538_s20, %s144_s21  }
  0x50 PF: > { %p261_p13 = scmp.ge.s32.totalorder %s421_s11, 2  ;;  %s171_s15 = sand.u32 1, %s401_s6  }
  0x51   : > { %p597_p1 = scmp.ne.s32.totalorder %s590_s18, 0  ;;  %s172_s17 = scalar_lea.sflag [#allocation4], %s171_s15 }
  0x53   : > { %p256_p6 = pnand %p261_p13, %p597_p1 }
  0x55   : > { %396 = dma.done.wait (!%p256_p6), %s172_s17, 128  }
  0x56   : > { %398 = vsyncadd (!%p256_p6), %s172_s17, 4294967168  ;;  %s15_s11 = sadd.s32 1, %s421_s11   ;;  %s598_s6 = smov %s405_s7 }
  0x57   : > { %p12_p7 = scmp.ge.s32.totalorder %s15_s11, 4   ;;  %s599_s7 = smov %s409_s8 }
  0x58   : > { %s600_s8 = smov %s488_s19  ;;  %s601_s9 = smov %s417_s10 }
  0x59   : > { %s602_s10 = smov %s604_s14  ;;  %14 = sbr.rel (!%p12_p7) target bundleno = 5 (0x5), region = 62 }
  0x60   :  { %177 = vsyncpa [#allocation3], 1 }
  0x61   :  { %179 = vsyncpa [#allocation3 + $0x1], 1 }
  0x62   :  { %180 = vsyncpa [#allocation4], 1 }
  0x63   :  { %182 = vsyncpa [#allocation4 + $0x1], 1 }

</bundles_post_ra>
